<compile_context>
chip_gen: v6e
topology: v6e:2x2x1
jax: 0.10.0
libtpu: 0.0.40
codegen_flags: <defaults>
</compile_context>

<pallas_src>
import functools

import jax
import jax.numpy as jnp
import numpy as np
from jax.experimental import pallas as pl
from jax.experimental.pallas import tpu as pltpu

_MIB = 1024 * 1024


def _ctrans_kernel(x_ref, vaug_ref, key_ref, wq_ref, bq_ref, gamma_ref, o_ref,
                   *, hw_true, mask_keys):
    """One (batch, query-tile) step of the _Ctrans forward (z=None).

    x_ref    : (1, C, TQ)      query-tile slice of x (also the residual), f32
    vaug_ref : (1, C+1, HW)    conv_value(y) with an appended ones row, bf16
    key_ref  : (1, P, HW)      conv_key(y) + bias, bf16
    wq_ref   : (P, C)          conv_query 1x1 weight, bf16
    bq_ref   : (P, 1)          conv_query bias, f32
    gamma_ref: (1, 1)          gamma scalar in SMEM
    o_ref    : (1, C, TQ)      output tile, f32
    """
    x = x_ref[0]                       # (C, TQ) f32
    vaug = vaug_ref[0]                 # (C+1, HW) bf16 (last row = ones)
    key = key_ref[0]                   # (P, HW) bf16
    wq = wq_ref[...]                   # (P, C) bf16
    bq = bq_ref[...]                   # (P, 1) f32
    gamma = gamma_ref[0, 0]

    # conv_query as a channel matmul on the query tile (bf16 in, f32 acc).
    query = jnp.dot(wq, x.astype(jnp.bfloat16),
                    preferred_element_type=jnp.float32) + bq             # (P, TQ)

    # sim = query^T @ key without materializing a transpose: contract dim 0
    # of both operands (bf16 in, f32 acc).
    sim = jax.lax.dot_general(
        query.astype(jnp.bfloat16), key,
        (((0,), (0,)), ((), ())),
        preferred_element_type=jnp.float32)                              # (TQ, HW)

    if mask_keys:
        # Zero-padded key columns must not contribute to the softmax.
        col = jax.lax.broadcasted_iota(jnp.int32, sim.shape, 1)
        sim = jnp.where(col < hw_true, sim, -1e30)

    # Softmax over the key axis with deferred normalization; only one
    # post-softmax (TQ, HW) slab is materialized, directly in bf16.
    m = jnp.max(sim, axis=-1, keepdims=True)                             # (TQ, 1)
    p = jnp.exp(sim - m).astype(jnp.bfloat16)                            # (TQ, HW)

    # Single contraction over HW: rows 0..C-1 give out_sim in (C, TQ) layout,
    # the last row (from the appended ones row) gives the softmax denominator.
    out_aug = jax.lax.dot_general(
        vaug, p, (((1,), (1,)), ((), ())),
        preferred_element_type=jnp.float32)                              # (C+1, TQ)

    # gamma multiplies the small (1, TQ) reciprocal, not the (C, TQ) tile.
    inv = pl.reciprocal(out_aug[-1:], approx=True) * gamma               # (1, TQ)
    o_ref[0] = x + out_aug[:-1] * inv


def _vmem_caps():
    """Generation-aware (tiling_budget_bytes, vmem_limit_bytes)."""
    cap = 64 * _MIB                       # conservative fallback (v7x-sized)
    try:
        info = pltpu.get_tpu_info()
        cap = int(getattr(info, "vmem_capacity_bytes", cap))
    except Exception:
        pass
    budget = max(cap - 36 * _MIB, cap // 2)      # 128 MiB -> ~92 MiB, 64 -> 32
    limit = max(cap - 16 * _MIB, budget + 8 * _MIB)
    return int(budget), int(limit)


def _estimate_vmem_bytes(C, P, HW_pad, tq):
    """Rough VMEM footprint: double-buffered blocks + kernel intermediates."""
    f32, bf16 = 4, 2
    blocks = 2 * (C * tq * f32                 # x tile (in)
                  + C * tq * f32               # output tile
                  + (C + 1) * HW_pad * bf16    # value + ones row
                  + P * HW_pad * bf16          # key
                  + P * C * bf16               # wq
                  + P * 128 * f32)             # bq (lane-padded)
    interm = (P * tq * (f32 + bf16)            # query f32 + bf16 copy
              + tq * HW_pad * (f32 + bf16)     # sim f32 + p bf16 (single slab)
              + (C + 1) * tq * f32             # out_aug
              + C * tq * (f32 + bf16))         # epilogue temps + x bf16 copy
    return blocks + interm


def _choose_tq(C, P, HW_pad, budget_bytes):
    """Largest query tile (multiple of 128, dividing padded HW) under budget."""
    candidates = [t for t in (2048, 1024, 512, 256, 128)
                  if t <= HW_pad and HW_pad % t == 0]
    if not candidates:
        return HW_pad                      # safeguard; HW_pad is always >= 128
    for t in candidates:                   # largest first
        if _estimate_vmem_bytes(C, P, HW_pad, t) <= budget_bytes:
            return t
    return candidates[-1]                  # smallest legal tile


def ctrans_forward(x, y, params, *, tq=None):
    """x, y: (B, C, H, W) float32. Returns (B, C, H, W)."""
    B, C, H, W = x.shape
    HW = H * W
    P = params["wq"].shape[0]
    HW_pad = ((HW + 127) // 128) * 128
    mask_keys = HW_pad != HW

    budget, vmem_limit = _vmem_caps()
    if tq is None:
        tq = _choose_tq(C, P, HW_pad, budget)
    if HW_pad % tq != 0:
        raise ValueError(f"tq={tq} must divide padded HW={HW_pad}")
    if tq % 128 != 0:
        raise ValueError(f"tq={tq} must be a multiple of 128")
    nq = HW_pad // tq

    x2 = x.reshape(B, C, HW)
    y2 = y.reshape(B, C, HW).astype(jnp.bfloat16)

    # Hoisted 1x1-conv projections on y (once per batch; bf16 in, f32 acc).
    value = jnp.einsum("oc,bcn->bon", params["wv"].astype(jnp.bfloat16), y2,
                       preferred_element_type=jnp.float32)                # (B,C,HW)
    key = jnp.einsum("oc,bcn->bon", params["wk"].astype(jnp.bfloat16), y2,
                     preferred_element_type=jnp.float32) + params["bk"][None]

    # Append a ones row so the in-kernel value contraction also yields the
    # softmax denominator.
    vaug = jnp.concatenate(
        [value, jnp.ones((B, 1, HW), value.dtype)], axis=1).astype(jnp.bfloat16)
    key_bf = key.astype(jnp.bfloat16)

    if mask_keys:
        pad = HW_pad - HW
        x2 = jnp.pad(x2, ((0, 0), (0, 0), (0, pad)))
        vaug = jnp.pad(vaug, ((0, 0), (0, 0), (0, pad)))
        key_bf = jnp.pad(key_bf, ((0, 0), (0, 0), (0, pad)))

    gamma = jnp.asarray(params["gamma"], jnp.float32).reshape(1, 1)
    wq_bf = params["wq"].astype(jnp.bfloat16)

    kernel = functools.partial(_ctrans_kernel, hw_true=HW, mask_keys=mask_keys)

    out = pl.pallas_call(
        kernel,
        out_shape=jax.ShapeDtypeStruct((B, C, HW_pad), jnp.float32),
        grid_spec=pltpu.PrefetchScalarGridSpec(
            num_scalar_prefetch=0,
            grid=(B, nq),
            in_specs=[
                pl.BlockSpec((1, C, tq), lambda b, q: (b, 0, q)),          # x tile
                pl.BlockSpec((1, C + 1, HW_pad), lambda b, q: (b, 0, 0)),  # value+1s
                pl.BlockSpec((1, P, HW_pad), lambda b, q: (b, 0, 0)),      # key
                pl.BlockSpec((P, C), lambda b, q: (0, 0)),                 # wq
                pl.BlockSpec((P, 1), lambda b, q: (0, 0)),                 # bq
                pl.BlockSpec(memory_space=pltpu.MemorySpace.SMEM),         # gamma
            ],
            out_specs=pl.BlockSpec((1, C, tq), lambda b, q: (b, 0, q)),
        ),
        compiler_params=pltpu.CompilerParams(
            dimension_semantics=("parallel", "arbitrary"),
            vmem_limit_bytes=vmem_limit),
    )(x2, vaug, key_bf, wq_bf, params["bq"], gamma)

    if mask_keys:
        out = out[:, :, :HW]
    return out.reshape(B, C, H, W)


def ctrans_reference(x, y, params):
    """Pure-JAX mirror of the torch forward (z=None path), for verification."""
    B, C, H, W = x.shape
    HW = H * W
    x2 = x.reshape(B, C, HW)
    y2 = y.reshape(B, C, HW)

    value = jnp.einsum("oc,bcn->bon", params["wv"], y2)
    query = jnp.einsum("oc,bcn->bon", params["wq"], x2) + params["bq"][None]
    key = jnp.einsum("oc,bcn->bon", params["wk"], y2) + params["bk"][None]

    sim = jnp.einsum("bpn,bpm->bnm", query, key)                 # (B, HW, HW)
    sim = jax.nn.softmax(sim, axis=2)
    out_sim = jnp.einsum("bnm,bcm->bnc", sim, value)             # (B, HW, C)
    out_sim = jnp.transpose(out_sim, (0, 2, 1))                  # (B, C, HW)
    out = x2 + jnp.reshape(params["gamma"], ())[None, None, None] * out_sim
    return out.reshape(B, C, H, W)


def init_params(key, inplanes, planes, weight_init_scale=1.0):
    """Parameter init matching the module's reset_parameters /
    reset_weight_and_weight_decay for the z=None path."""
    k_wv, k_wq, k_wk = jax.random.split(key, 3)
    wv = 0.01 * jax.random.normal(k_wv, (inplanes, inplanes), jnp.float32)
    wq = (0.01 * weight_init_scale) * jax.random.normal(
        k_wq, (planes, inplanes), jnp.float32)
    wk = (0.01 * weight_init_scale) * jax.random.normal(
        k_wk, (planes, inplanes), jnp.float32)
    bq = jnp.zeros((planes, 1), jnp.float32)
    bk = jnp.zeros((planes, 1), jnp.float32)
    gamma = jnp.zeros((1, 1), jnp.float32)
    return {"wv": wv, "wq": wq, "bq": bq, "wk": wk, "bk": bk, "gamma": gamma}


if __name__ == "__main__":
    B, C, H, W = 2, 4, 16, 16   # inplanes = 4, HW = 256
    P = 4                       # planes = 4

    key = jax.random.PRNGKey(0)
    k_x, k_y, k_p = jax.random.split(key, 3)
    x = jax.random.normal(k_x, (B, C, H, W), jnp.float32)
    y = jax.random.normal(k_y, (B, C, H, W), jnp.float32)
    params = init_params(k_p, C, P, weight_init_scale=1.0)

    # gamma is zero at init; also check with nonzero gamma so the attention
    # path actually contributes to the verified output.
    params_nz = dict(params)
    params_nz["gamma"] = jnp.full((1, 1), 0.7, jnp.float32)

    ref = ctrans_reference(x, y, params)
    ref_nz = ctrans_reference(x, y, params_nz)

    # Multi-tile path: HW=256 with tq=128 -> 2 query tiles per batch element.
    out = jax.block_until_ready(ctrans_forward(x, y, params, tq=128))
    np.testing.assert_allclose(np.asarray(out), np.asarray(ref),
                               rtol=5e-3, atol=2e-3)
    out_nz = jax.block_until_ready(ctrans_forward(x, y, params_nz, tq=128))
    np.testing.assert_allclose(np.asarray(out_nz), np.asarray(ref_nz),
                               rtol=5e-3, atol=2e-3)

    # Auto tile selection (single full-extent query tile at this HW).
    out_auto = jax.block_until_ready(ctrans_forward(x, y, params_nz))
    np.testing.assert_allclose(np.asarray(out_auto), np.asarray(ref_nz),
                               rtol=5e-3, atol=2e-3)

    # Non-multiple-of-128 spatial size exercises the padding + key-mask path.
    xs = jax.random.normal(jax.random.PRNGKey(1), (1, C, 9, 9), jnp.float32)
    ys = jax.random.normal(jax.random.PRNGKey(2), (1, C, 9, 9), jnp.float32)
    out_pad = jax.block_until_ready(ctrans_forward(xs, ys, params_nz))
    np.testing.assert_allclose(np.asarray(out_pad),
                               np.asarray(ctrans_reference(xs, ys, params_nz)),
                               rtol=5e-3, atol=2e-3)

    print("KERNEL_OK")
</pallas_src>

<mosaic_0001>
module attributes {stable_mosaic.version = 11 : i64} {
  func.func @_ctrans_kernel(%arg0: i32, %arg1: i32, %arg2: memref<1x4x128xf32, #tpu.memory_space<vmem>>, %arg3: memref<1x5x256xbf16, #tpu.memory_space<vmem>>, %arg4: memref<1x4x256xbf16, #tpu.memory_space<vmem>>, %arg5: memref<4x4xbf16, #tpu.memory_space<vmem>>, %arg6: memref<4x1xf32, #tpu.memory_space<vmem>>, %arg7: memref<1x1xf32, #tpu.memory_space<smem>>, %arg8: memref<1x4x128xf32, #tpu.memory_space<vmem>>) attributes {dimension_semantics = [#tpu.dimension_semantics<parallel>, #tpu.dimension_semantics<arbitrary>], iteration_bounds = array<i64: 2, 2>, scalar_prefetch = 0 : i64, scratch_operands = 0 : i64, tpu.core_type = #tpu.core_type<tc>, window_params = [{transform_indices = @transform_0, window_bounds = array<i64: 1, 4, 128>}, {transform_indices = @transform_1, window_bounds = array<i64: 1, 5, 256>}, {transform_indices = @transform_2, window_bounds = array<i64: 1, 4, 256>}, {pipeline_mode = #tpu.pipeline_mode<synchronous>, transform_indices = @transform_3, window_bounds = array<i64: 4, 4>}, {pipeline_mode = #tpu.pipeline_mode<synchronous>, transform_indices = @transform_4, window_bounds = array<i64: 4, 1>}, {transform_indices = @transform_5, window_bounds = array<i64: 1, 1>}, {transform_indices = @transform_6, window_bounds = array<i64: 1, 4, 128>}]} {
    %c0 = arith.constant 0 : index
    %c0_0 = arith.constant 0 : index
    %c0_1 = arith.constant 0 : index
    %0 = vector.load %arg2[%c0, %c0_0, %c0_1] : memref<1x4x128xf32, #tpu.memory_space<vmem>>, vector<1x4x128xf32>
    %1 = vector.shape_cast %0 : vector<1x4x128xf32> to vector<4x128xf32>
    %c0_2 = arith.constant 0 : index
    %c0_3 = arith.constant 0 : index
    %c0_4 = arith.constant 0 : index
    %2 = vector.load %arg3[%c0_2, %c0_3, %c0_4] : memref<1x5x256xbf16, #tpu.memory_space<vmem>>, vector<1x5x256xbf16>
    %3 = vector.shape_cast %2 : vector<1x5x256xbf16> to vector<5x256xbf16>
    %c0_5 = arith.constant 0 : index
    %c0_6 = arith.constant 0 : index
    %c0_7 = arith.constant 0 : index
    %4 = vector.load %arg4[%c0_5, %c0_6, %c0_7] : memref<1x4x256xbf16, #tpu.memory_space<vmem>>, vector<1x4x256xbf16>
    %5 = vector.shape_cast %4 : vector<1x4x256xbf16> to vector<4x256xbf16>
    %c0_8 = arith.constant 0 : index
    %c0_9 = arith.constant 0 : index
    %6 = vector.load %arg5[%c0_8, %c0_9] : memref<4x4xbf16, #tpu.memory_space<vmem>>, vector<4x4xbf16>
    %c0_10 = arith.constant 0 : index
    %c0_11 = arith.constant 0 : index
    %7 = vector.load %arg6[%c0_10, %c0_11] : memref<4x1xf32, #tpu.memory_space<vmem>>, vector<4x1xf32>
    %c0_12 = arith.constant 0 : index
    %c0_13 = arith.constant 0 : index
    %8 = memref.load %arg7[%c0_12, %c0_13] : memref<1x1xf32, #tpu.memory_space<smem>>
    %9 = arith.truncf %1 : vector<4x128xf32> to vector<4x128xbf16>
    %cst = arith.constant dense<0.000000e+00> : vector<4x128xf32>
    %10 = tpu.matmul %6, %9, %cst {dimension_numbers = #tpu.dot_dimension_numbers<[1], [0], [0], [1], [0, 0, 1, 1], [], []>} : vector<4x4xbf16>, vector<4x128xbf16>, vector<4x128xf32> -> vector<4x128xf32>
    %11 = vector.broadcast %7 : vector<4x1xf32> to vector<4x128xf32>
    %12 = arith.addf %10, %11 : vector<4x128xf32>
    %13 = arith.truncf %12 : vector<4x128xf32> to vector<4x128xbf16>
    %cst_14 = arith.constant dense<0.000000e+00> : vector<128x256xf32>
    %14 = tpu.matmul %13, %5, %cst_14 {dimension_numbers = #tpu.dot_dimension_numbers<[0], [0], [1], [1], [0, 1, 1, 1], [], []>} : vector<4x128xbf16>, vector<4x256xbf16>, vector<128x256xf32> -> vector<128x256xf32>
    %cst_15 = arith.constant dense<0xFF800000> : vector<128xf32>
    %15 = vector.multi_reduction <maximumf>, %14, %cst_15 [1] : vector<128x256xf32> to vector<128xf32>
    %16 = vector.shape_cast %15 : vector<128xf32> to vector<128x1xf32>
    %17 = vector.broadcast %16 : vector<128x1xf32> to vector<128x256xf32>
    %18 = arith.subf %14, %17 : vector<128x256xf32>
    %19 = math.exp %18 : vector<128x256xf32>
    %20 = arith.truncf %19 : vector<128x256xf32> to vector<128x256xbf16>
    %cst_16 = arith.constant dense<0.000000e+00> : vector<5x128xf32>
    %21 = tpu.matmul %3, %20, %cst_16 {dimension_numbers = #tpu.dot_dimension_numbers<[1], [1], [0], [0], [0, 0, 1, 0], [], []>} : vector<5x256xbf16>, vector<128x256xbf16>, vector<5x128xf32> -> vector<5x128xf32>
    %22 = vector.extract_strided_slice %21 {offsets = [4, 0], sizes = [1, 128], strides = [1, 1]} : vector<5x128xf32> to vector<1x128xf32>
    %23 = tpu.reciprocal %22 {approx = true} : vector<1x128xf32> -> vector<1x128xf32>
    %24 = vector.broadcast %8 : f32 to vector<1x128xf32>
    %25 = arith.mulf %23, %24 : vector<1x128xf32>
    %26 = vector.extract_strided_slice %21 {offsets = [0, 0], sizes = [4, 128], strides = [1, 1]} : vector<5x128xf32> to vector<4x128xf32>
    %27 = vector.broadcast %25 : vector<1x128xf32> to vector<4x128xf32>
    %28 = arith.mulf %26, %27 : vector<4x128xf32>
    %29 = arith.addf %1, %28 : vector<4x128xf32>
    %c0_17 = arith.constant 0 : index
    %c0_18 = arith.constant 0 : index
    %c0_19 = arith.constant 0 : index
    %30 = vector.load %arg8[%c0_17, %c0_18, %c0_19] : memref<1x4x128xf32, #tpu.memory_space<vmem>>, vector<1x4x128xf32>
    %31 = vector.shape_cast %30 : vector<1x4x128xf32> to vector<4x128xf32>
    %32 = vector.shape_cast %29 : vector<4x128xf32> to vector<1x4x128xf32>
    tpu.vector_store %arg8[%c0_17, %c0_18, %c0_19], %32 {strides = array<i32>} : memref<1x4x128xf32, #tpu.memory_space<vmem>>, vector<1x4x128xf32>,
    return
  }
  func.func @transform_0(%arg0: i32, %arg1: i32) -> (i32, i32, i32) {
    %c0_i32 = arith.constant 0 : i32
    %c0_i32_0 = arith.constant 0 : i32
    return %arg0, %c0_i32, %arg1 : i32, i32, i32
  }
  func.func @transform_1(%arg0: i32, %arg1: i32) -> (i32, i32, i32) {
    %c0_i32 = arith.constant 0 : i32
    %c0_i32_0 = arith.constant 0 : i32
    %c0_i32_1 = arith.constant 0 : i32
    return %arg0, %c0_i32, %c0_i32_0 : i32, i32, i32
  }
  func.func @transform_2(%arg0: i32, %arg1: i32) -> (i32, i32, i32) {
    %c0_i32 = arith.constant 0 : i32
    %c0_i32_0 = arith.constant 0 : i32
    %c0_i32_1 = arith.constant 0 : i32
    return %arg0, %c0_i32, %c0_i32_0 : i32, i32, i32
  }
  func.func @transform_3(%arg0: i32, %arg1: i32) -> (i32, i32) {
    %c0_i32 = arith.constant 0 : i32
    %c0_i32_0 = arith.constant 0 : i32
    %c0_i32_1 = arith.constant 0 : i32
    return %c0_i32, %c0_i32_0 : i32, i32
  }
  func.func @transform_4(%arg0: i32, %arg1: i32) -> (i32, i32) {
    %c0_i32 = arith.constant 0 : i32
    %c0_i32_0 = arith.constant 0 : i32
    %c0_i32_1 = arith.constant 0 : i32
    return %c0_i32, %c0_i32_0 : i32, i32
  }
  func.func @transform_5(%arg0: i32, %arg1: i32) -> (i32, i32) {
    %c0_i32 = arith.constant 0 : i32
    %c0_i32_0 = arith.constant 0 : i32
    %c0_i32_1 = arith.constant 0 : i32
    return %c0_i32, %c0_i32_0 : i32, i32
  }
  func.func @transform_6(%arg0: i32, %arg1: i32) -> (i32, i32, i32) {
    %c0_i32 = arith.constant 0 : i32
    %c0_i32_0 = arith.constant 0 : i32
    return %arg0, %c0_i32, %arg1 : i32, i32, i32
  }
}

</mosaic_0001>

<bundles_post_ra>
// kernel: tpu_custom_call.1
= control target key start
LH: loop header
LB: loop body
LE: loop exit
PB: predicated region body
PF: predicated region fallthrough
CT: control target
= control target key end

     0   :  { %s1465_s0 = inlined_call_operand.vmem [shape: f32[2,4,256], index: 0, kind: input, shape index: {}]   ;;  %s1466_s1 = inlined_call_operand.vmem [shape: bf16[2,5,256], index: 1, kind: input, shape index: {}]   ;;  %s1467_s2 = inlined_call_operand.vmem [shape: bf16[2,4,256], index: 2, kind: input, shape index: {}]   ;;  %s1468_s3 = inlined_call_operand.vmem [shape: bf16[4,4], index: 3, kind: input, shape index: {}]   ;;  %s1469_s4 = inlined_call_operand.vmem [shape: f32[4,1], index: 4, kind: input, shape index: {}]   ;;  %s1470_s5 = inlined_call_operand.<no memory space> [shape: f32[1,1], index: 5, kind: input, shape index: {}]   ;;  %s1471_s6 = inlined_call_operand.hbm [shape: f32[2,4,256], index: 6, kind: output, shape index: {}]  }
   0x1   :  { %11 = sst [smem:[#allocation2]] %s1470_s5 }
   0x2   :  { %12 = vsyncpa [#allocation4], 0 }
   0x3   :  { %14 = vsyncpa [#allocation4 + $0x1], 0  ;;  %s1200_s23 = smov 0   ;;  %s1202_s24 = smov 0  }
   0x4   :  { %s1204_s25 = smov 0   ;;  %s1206_s26 = smov 0  }
   0x5   :  { %s1208_s27 = smov 0   ;;  %s1210_s28 = smov 0  }
   0x6   :  { %s1212_s29 = smov 0   ;;  %s1214_s30 = smov 0  }
   0x7 LB: > { %s881_s5 = sadd.s32 4294967295, %s1156_s30   ;;  %s882_s7 = sadd.s32 4294967294, %s1156_s30   ;;  %s1156_s30 = sphi %s1214_s30, %s20_s30   ;;  %s1152_s29 = sphi %s1212_s29, %s1480_s29   ;;  %s1148_s28 = sphi %s1210_s28, %s1479_s28   ;;  %s1144_s27 = sphi %s1208_s27, %s1478_s27   ;;  %s1140_s26 = sphi %s1206_s26, %s1477_s26   ;;  %s1136_s25 = sphi %s1204_s25, %s1476_s25   ;;  %s1132_s24 = sphi %s1202_s24, %s1475_s24   ;;  %s1128_s23 = sphi %s1200_s23, %s1474_s23  }
   0x8   : > { %s29_s8 = sadd.s32 1, %s1148_s28  ;;  %s32_s9 = sadd.s32 1, %s1152_s29 }
   0x9   : > { %p30_p0 = scmp.ge.s32.totalorder %s29_s8, 2  ;;  %p194_p1 = scmp.ne.s32.totalorder %s1136_s25, %s1132_s24 }
   0xa   : > { %p195_p2 = scmp.eq.s32.totalorder %s881_s5, 3  ;;  %p200_p5 = scmp.ne.s32.totalorder %s1132_s24, %s1128_s23 }
   0xb   : > { %s1482_s8 = smov (%p30_p0, %s29_s8), 0  ;;  %s1484_s9 = smov (!%p30_p0, %s32_s9), %s1152_s29 }
   0xc   : > { %s180_s10 = ssub.s32 %s1148_s28, %s1482_s8  ;;  %p1251_p3 = por %p195_p2, %p194_p1 }
   0xd   : > { %p34_p4 = scmp.ge.s32.totalorder %s1484_s9, 2  ;;  %p201_p6 = scmp.eq.s32.totalorder %s882_s7, 3 }
   0xe   : > { %p885_p7 = scmp.ge.s32.totalorder %s1156_s30, 1  ;;  %p255_p9 = scmp.lt.s32.totalorder %s1156_s30, 5 }
   0xf   : > { %s1486_s9 = smov (%p34_p4, %s1484_s9), 0  ;;  %p1260_p8 = por %p201_p6, %p200_p5 }
  0x10   : > { %s179_s13 = ssub.s32 %s1152_s29, %s1486_s9  ;;  %s184_s14 = sadd.s32 1, %s1136_s25 }
  0x11   : > { %s181_s15 = sor.u32 %s180_s10, %s179_s13  ;;  %p256_p10 = pnand %p885_p7, %p255_p9 }
  0x12   : > { %p182_p11 = scmp.eq.s32.totalorder %s181_s15, 0  ;;  %p298_p12 = scmp.lt.s32.totalorder (!%p256_p10), %s1144_s27, 1 }
  0x13   : > { %259 = sbr.rel (%p256_p10) target bundleno = 1041 (0x411), region = 44  ;;  %p300_p13 = scmp.lt.s32.totalorder (!%p256_p10), %s1140_s26, 1 }
  0x14   : > { %s1269_s16 = scalar_select %p182_p11, %s1136_s25, %s184_s14  }
  0x15   : > { %s907_s15 = sshll.u32 (!%p256_p10), %s1144_s27, 1 }
  0x18   : > { %v1158_v0 = vmov 0.0   ;;  %vm1159_vm0 = vmmov 0   ;;  %v321_v1 = vld [vmem:[%s1469_s4] sm:$0xf]  ;;  %s1277_s19 = scalar_select %p298_p12, %s1144_s27, 1  ;;  %v1160_v2 = vmov 0  }
  0x19   : > { %915 = vmatprep.subr.bf16.mxu0 %v1158_v0  ;;  %917 = vmatprep.mubr.msk.bf16.mxu0 %vm1159_vm0, %v1158_v0  ;;  %s301_s20 = scalar_select %p300_p13, %s1140_s26, 1  ;;  %vm333_vm1 = vcmask 1041408   ;;  %v320_v6 = vld [vmem:[%s1468_s3] sm:$0x3]  ;;  %vm329_vm2 = vcmask 31744  }
  0x1a   : > { %995 = vset.pattern.permute.xlu0 %v1160_v2  ;;  %465 = vmatprep.mubr.bf16.mxu1 %v1160_v2  ;;  %s887_s21 = sshll.u32 %s1277_s19, 1  ;;  %s912_s17 = sshll.u32 %s1277_s19, 2 }
  0x1b   : > { %326 = vperm.xlu0 %995, %v321_v1   ;;  %s303_s22 = sadd.s32 %s887_s21, %s301_s20  ;;  %s315_s21 = scalar_lea.vmem %s1467_s2, %s912_s17 }
  0x1c   : > { %s888_s5 = sshll.u32 %s303_s22, 2  ;;  %v894_v7 = vld.sshfl [vmem:[%s315_s21] sm:$0x33 pattern:$0x76325410]  ;;  %s911_s22 = sshll.u32 %s1277_s19, 3 }
  0x1d   : > { %s305_s13 = scalar_lea.vmem %s1465_s0, %s888_s5  ;;  %v402_v8 = vcombine.high %v894_v7, %v894_v7  ;;  %v428_v9 = vsel %vm333_vm1, %v894_v7, 0  ;;  %s310_s10 = scalar_lea.vmem %s1466_s1, %s911_s22 }
  0x1e   : > { %v1284_v3 = vld [vmem:[%s305_s13] sm:$0xf]  ;;  %s322_s19 = sld [smem:[#allocation2]]  ;;  %s295_s13 = sand.u32 1, %s1132_s24  }
  0x1f   : > { %v323_v4 = vpack.c.bf16 %v1284_v3, %v1284_v3  ;;  %895 = vmatprep.subr.msk.bf16.mxu1 %vm333_vm1, %v402_v8  ;;  %s886_s14 = sshll.u32 %s295_s13, 2  ;;  %s775_s17 = sadd.s32 %s1140_s26, %s907_s15 }
  0x20   : > { %448 = vmatpush1.bf16.msra.mxu1 %v428_v9  ;;  %s908_s18 = sshll.u32 %s775_s17, 6  ;;  %s297_s20 = scalar_lea.vmem [#allocation3], %s886_s14 }
  0x21   : > { %v335_v5 = vsel %vm333_vm1, %v323_v4, 0  ;;  %s779_s21 = sshll.u32 %s297_s20, 4  ;;  %s777_s7 = scalar_lea.hbm %s1471_s6, %s908_s18  ;;  %s780_s21 = int_to_ptr.vmem [resolvable:$true] %s779_s21 }
  0x22   : > { %916 = vmatpush3.bf16.msra.mxu0 %v335_v5  ;;  %s1064_s27 = scalar_lea.vmem %s780_s21, 64  ;;  %s1161_s26 = smov [#allocation3]  }
  0x23   : > { %p1065_p0 = scmp.ne.s32.totalorder %s780_s21, %s1064_s27 }
  0x25   : > { %918 = vmatmul.mubr.msk.bf16.vlgmr.msra.gmra.mxu0 %vm329_vm2, %v320_v6  ;;  %p1066_p1 = pnand %p1065_p0, %p1251_p3 }
  0x27   : > { %p1067_p2 = pneg %p1066_p1 }
  0x96   : > { %v327_v10 = vpop.permute.xlu0 %326 }
  0xe5   : > { %v371_v11 = vpop.f32.mrf.mxu0 }
  0xe6   : > { %v372_v12 = vadd.f32 %v371_v11, %v327_v10  ;;  %v1386_v10 = vld [vmem:[%s310_s10] sm:$0x77]  ;;  %s764_s10 = scalar_lea.sflag [#allocation4], %s295_s13 }
  0xe7   : > { %v919_v13 = vpop.f32.mrf.mxu0  ;;  %v905_v11 = vcombine.high %v1386_v10, %v1386_v10 }
  0xe8   : > { %v377_v14 = vpack.c.bf16 %v372_v12, %v372_v12 }
  0xe9   : > { %v374_v15 = vpop.f32.mrf.mxu0  ;;  %745 = vmatprep.mubr.bf16.mxu0 %v905_v11 }
  0xea   : > { %378 = vxpose.xlu0.c.b16.start.end [1/1] (short) %v377_v14, 128 }
  0xeb   : > { %v920_v16 = vpop.f32.mrf.mxu0 }
 0x14c   : > { %v386_v17 = vpop.trf.xlu0 }
 0x14d   : > { %896 = vmatmul.mubr.msk.bf16.vlgmr.msra.gmra.mxu1 %vm329_vm2, %v386_v17 }
 0x14e   : > { %475 = vmatprep.mubr.bf16.mxu1 %v1160_v2 }
 0x150   : > { %v387_v18 = vpop.trf.xlu0 }
 0x154   : > { %v388_v19 = vpop.trf.xlu0 }
 0x155   : > { %897 = vmatmul.mubr.msk.bf16.gmra.mxu1 %vm329_vm2, %v387_v18 }
 0x156   : > { %485 = vmatprep.mubr.bf16.mxu1 %v1160_v2 }
 0x158   : > { %v389_v20 = vpop.trf.xlu0 }
 0x15c   : > { %v390_v21 = vpop.trf.xlu0 }
 0x15d   : > { %898 = vmatmul.mubr.msk.bf16.gmra.mxu1 %vm329_vm2, %v388_v19 }
 0x15e   : > { %495 = vmatprep.mubr.bf16.mxu1 %v1160_v2 }
 0x160   : > { %v391_v22 = vpop.trf.xlu0 }
 0x164   : > { %v392_v23 = vpop.trf.xlu0 }
 0x165   : > { %899 = vmatmul.mubr.msk.bf16.gmra.mxu1 %vm329_vm2, %v389_v20 }
 0x166   : > { %505 = vmatprep.mubr.bf16.mxu1 %v1160_v2 }
 0x168   : > { %v393_v24 = vpop.trf.xlu0 }
 0x16d   : > { %900 = vmatmul.mubr.msk.bf16.gmra.mxu1 %vm329_vm2, %v390_v21 }
 0x16e   : > { %515 = vmatprep.mubr.bf16.mxu1 %v1160_v2 }
 0x175   : > { %901 = vmatmul.mubr.msk.bf16.gmra.mxu1 %vm329_vm2, %v391_v22 }
 0x176   : > { %525 = vmatprep.mubr.bf16.mxu1 %v1160_v2 }
 0x17d   : > { %902 = vmatmul.mubr.msk.bf16.gmra.mxu1 %vm329_vm2, %v392_v23 }
 0x17e   : > { %535 = vmatprep.mubr.bf16.mxu1 %v1160_v2 }
 0x185   : > { %903 = vmatmul.mubr.msk.bf16.gmra.mxu1 %vm329_vm2, %v393_v24 }
 0x20d   : > { %v1304_v25 = vpop.f32.mrf.mxu1 }
 0x20f   : > { %v1306_v26 = vpop.f32.mrf.mxu1 }
 0x210   : > { %v546_v8 = vmax.f32 %v1304_v25, %v1306_v26 }
 0x211   : > { %v1308_v27 = vpop.f32.mrf.mxu1 }
 0x213   : > { %v1310_v28 = vpop.f32.mrf.mxu1 }
 0x214   : > { %v549_v9 = vmax.f32 %v1308_v27, %v1310_v28 }
 0x215   : > { %v1312_v29 = vpop.f32.mrf.mxu1 }
 0x217   : > { %v1314_v30 = vpop.f32.mrf.mxu1 }
 0x218   : > { %v552_v6 = vmax.f32 %v1312_v29, %v1314_v30 }
 0x219   : > { %v1316_v31 = vpop.f32.mrf.mxu1 }
 0x21b   : > { %v1318_v32 = vpop.f32.mrf.mxu1 }
 0x21c   : > { %v555_v7 = vmax.f32 %v1316_v31, %v1318_v32 }
 0x21d   : > { %v1320_v33 = vpop.f32.mrf.mxu1 }
 0x21f   : > { %v1322_v34 = vpop.f32.mrf.mxu1 }
 0x220   : > { %v558_v4 = vmax.f32 %v1320_v33, %v1322_v34 }
 0x221   : > { %v1324_v35 = vpop.f32.mrf.mxu1 }
 0x223   : > { %v1326_v36 = vpop.f32.mrf.mxu1 }
 0x224   : > { %v561_v5 = vmax.f32 %v1324_v35, %v1326_v36 }
 0x225   : > { %v1328_v37 = vpop.f32.mrf.mxu1 }
 0x227   : > { %v1330_v38 = vpop.f32.mrf.mxu1 }
 0x228   : > { %v564_v2 = vmax.f32 %v1328_v37, %v1330_v38 }
 0x229   : > { %v1332_v39 = vpop.f32.mrf.mxu1 }
 0x22b   : > { %v1334_v40 = vpop.f32.mrf.mxu1 }
 0x22c   : > { %v567_v41 = vmax.f32 %v1332_v39, %v1334_v40 }
 0x22d   : > { %v1338_v42 = vpop.f32.mrf.mxu1 }
 0x22e   : > { %568 = vmax.xlane.f32.xlu0 %v567_v41 }
 0x22f   : > { %v1340_v43 = vpop.f32.mrf.mxu1 }
 0x230   : > { %v570_v0 = vmax.f32 %v1338_v42, %v1340_v43 }
 0x231   : > { %v1342_v44 = vpop.f32.mrf.mxu1 }
 0x233   : > { %v1344_v45 = vpop.f32.mrf.mxu1 }
 0x234   : > { %v573_v1 = vmax.f32 %v1342_v44, %v1344_v45 }
 0x235   : > { %v1346_v46 = vpop.f32.mrf.mxu1 }
 0x237   : > { %v1348_v47 = vpop.f32.mrf.mxu1 }
 0x238   : > { %v576_v62 = vmax.f32 %v1346_v46, %v1348_v47 }
 0x239   : > { %v1350_v48 = vpop.f32.mrf.mxu1 }
 0x23b   : > { %v1352_v49 = vpop.f32.mrf.mxu1 }
 0x23c   : > { %v579_v63 = vmax.f32 %v1350_v48, %v1352_v49 }
 0x23d   : > { %v527_v50 = vpop.f32.mrf.mxu1 }
 0x23f   : > { %v529_v51 = vpop.f32.mrf.mxu1 }
 0x240   : > { %v582_v60 = vmax.f32 %v527_v50, %v529_v51 }
 0x241   : > { %v1354_v52 = vpop.f32.mrf.mxu1 }
 0x243   : > { %v1356_v53 = vpop.f32.mrf.mxu1 }
 0x244   : > { %v585_v61 = vmax.f32 %v1354_v52, %v1356_v53 }
 0x245   : > { %v537_v54 = vpop.f32.mrf.mxu1 }
 0x247   : > { %v539_v55 = vpop.f32.mrf.mxu1 }
 0x248   : > { %v588_v56 = vmax.f32 %v537_v54, %v539_v55 }
 0x249   : > { %v541_v57 = vpop.f32.mrf.mxu1 }
 0x24a   : > { %589 = vmax.xlane.f32.xlu1 %v588_v56 }
 0x24b   : > { %v543_v58 = vpop.f32.mrf.mxu1 }
 0x24c   : > { %v591_v59 = vmax.f32 %v541_v57, %v543_v58 }
 0x24e   : > { %592 = vmax.xlane.f32.xlu1 %v591_v59 }
 0x252   : > { %583 = vmax.xlane.f32.xlu1 %v582_v60 }
 0x256   : > { %586 = vmax.xlane.f32.xlu1 %v585_v61 }
 0x25a   : > { %577 = vmax.xlane.f32.xlu1 %v576_v62 }
 0x25e   : > { %580 = vmax.xlane.f32.xlu1 %v579_v63 }
 0x262   : > { %571 = vmax.xlane.f32.xlu1 %v570_v0 }
 0x266   : > { %574 = vmax.xlane.f32.xlu1 %v573_v1 }
 0x26a   : > { %565 = vmax.xlane.f32.xlu1 %v564_v2 }
 0x26e   : > { %559 = vmax.xlane.f32.xlu1 %v558_v4 }
 0x272   : > { %562 = vmax.xlane.f32.xlu1 %v561_v5 }
 0x276   : > { %553 = vmax.xlane.f32.xlu1 %v552_v6 }
 0x27a   : > { %556 = vmax.xlane.f32.xlu1 %v555_v7 }
 0x27e   : > { %547 = vmax.xlane.f32.xlu1 %v546_v8 }
 0x282   : > { %550 = vmax.xlane.f32.xlu1 %v549_v9 }
 0x2b7   : > { %v569_v11 = vpop.xlane.xlu0 %568 }
 0x2d3   : > { %v590_v12 = vpop.xlane.xlu1 %589 }
 0x2d4   : > { %v622_v13 = vsub.f32 %v537_v54, %v590_v12  ;;  %v623_v14 = vsub.f32 %v539_v55, %v590_v12 }
 0x2d6   : > { %v682_v15 = vmul.f32 1.442695, %v622_v13  ;;  %v684_v16 = vmul.f32 1.442695, %v623_v14 }
 0x2d7   : > { %v593_v17 = vpop.xlane.xlu1 %592 }
 0x2d8   : > { %v624_v18 = vsub.f32 %v541_v57, %v593_v17  ;;  %v625_v19 = vsub.f32 %v543_v58, %v593_v17  ;;  %998 = vpow2.f32 %v682_v15  ;;  %v609_v15 = vsub.f32 %v1334_v40, %v569_v11 }
 0x2d9   : > { %1000 = vpow2.f32 %v684_v16  ;;  %v608_v40 = vsub.f32 %v1332_v39, %v569_v11 }
 0x2da   : > { %v686_v20 = vmul.f32 1.442695, %v624_v18  ;;  %v688_v21 = vmul.f32 1.442695, %v625_v19 }
 0x2db   : > { %v584_v22 = vpop.xlane.xlu1 %583 }
 0x2dc   : > { %1002 = vpow2.f32 %v686_v20  ;;  %v618_v23 = vsub.f32 %v527_v50, %v584_v22  ;;  %v619_v24 = vsub.f32 %v529_v51, %v584_v22 }
 0x2dd   : > { %1004 = vpow2.f32 %v688_v21 }
 0x2de   : > { %v674_v41 = vmul.f32 1.442695, %v618_v23  ;;  %v676_v56 = vmul.f32 1.442695, %v619_v24  ;;  %v656_v23 = vmul.f32 1.442695, %v609_v15 }
 0x2df   : > { %v587_v59 = vpop.xlane.xlu1 %586 }
 0x2e0   : > { %v620_v54 = vsub.f32 %v1354_v52, %v587_v59  ;;  %v621_v55 = vsub.f32 %v1356_v53, %v587_v59  ;;  %1006 = vpow2.f32 %v674_v41 }
 0x2e1   : > { %1008 = vpow2.f32 %v676_v56 }
 0x2e2   : > { %v678_v60 = vmul.f32 1.442695, %v620_v54  ;;  %v680_v57 = vmul.f32 1.442695, %v621_v55 }
 0x2e3   : > { %v578_v58 = vpop.xlane.xlu1 %577 }
 0x2e4   : > { %1010 = vpow2.f32 %v678_v60  ;;  %v614_v61 = vsub.f32 %v1346_v46, %v578_v58  ;;  %v615_v62 = vsub.f32 %v1348_v47, %v578_v58 }
 0x2e5   : > { %1012 = vpow2.f32 %v680_v57  ;;  %v999_v51 = vpop.eup %998  ;;  %v654_v57 = vmul.f32 1.442695, %v608_v40 }
 0x2e6   : > { %v666_v50 = vmul.f32 1.442695, %v614_v61  ;;  %v668_v63 = vmul.f32 1.442695, %v615_v62  ;;  %v1001_v1 = vpop.eup %1000 }
 0x2e7   : > { %v581_v0 = vpop.xlane.xlu1 %580 }
 0x2e8   : > { %v616_v52 = vsub.f32 %v1350_v48, %v581_v0  ;;  %v617_v53 = vsub.f32 %v1352_v49, %v581_v0  ;;  %1014 = vpow2.f32 %v666_v50 }
 0x2e9   : > { %v1003_v2 = vpop.eup %1002  ;;  %1016 = vpow2.f32 %v668_v63 }
 0x2ea   : > { %v1005_v4 = vpop.eup %1004  ;;  %v670_v5 = vmul.f32 1.442695, %v616_v52  ;;  %v672_v6 = vmul.f32 1.442695, %v617_v53  ;;  %v704_v7 = vpack.c.bf16 %v1003_v2, %v999_v51 }
 0x2eb   : > { %v572_v46 = vpop.xlane.xlu1 %571  ;;  %v705_v8 = vpack.c.bf16 %v1005_v4, %v1001_v1 }
 0x2ec   : > { %1018 = vpow2.f32 %v670_v5  ;;  %v610_v47 = vsub.f32 %v1338_v42, %v572_v46  ;;  %v611_v9 = vsub.f32 %v1340_v43, %v572_v46 }
 0x2ed   : > { %1020 = vpow2.f32 %v672_v6  ;;  %713 = vmatprep.subr.bf16.mxu0 %v705_v8  ;;  %v1007_v49 = vpop.eup %1006 }
 0x2ee   : > { %v658_v48 = vmul.f32 1.442695, %v610_v47  ;;  %714 = vmatpush1.bf16.xpose.msra.mxu0 %v704_v7  ;;  %v660_v12 = vmul.f32 1.442695, %v611_v9  ;;  %v1009_v14 = vpop.eup %1008 }
 0x2ef   : > { %v575_v13 = vpop.xlane.xlu1 %574 }
 0x2f0   : > { %v612_v16 = vsub.f32 %v1342_v44, %v575_v13  ;;  %v613_v17 = vsub.f32 %v1344_v45, %v575_v13  ;;  %1022 = vpow2.f32 %v658_v48 }
 0x2f1   : > { %v1011_v18 = vpop.eup %1010  ;;  %1024 = vpow2.f32 %v660_v12 }
 0x2f2   : > { %v1013_v19 = vpop.eup %1012  ;;  %v662_v42 = vmul.f32 1.442695, %v612_v16  ;;  %v664_v43 = vmul.f32 1.442695, %v613_v17  ;;  %v702_v20 = vpack.c.bf16 %v1011_v18, %v1007_v49 }
 0x2f3   : > { %v566_v21 = vpop.xlane.xlu1 %565  ;;  %v703_v22 = vpack.c.bf16 %v1013_v19, %v1009_v14 }
 0x2f4   : > { %1026 = vpow2.f32 %v662_v42  ;;  %v606_v24 = vsub.f32 %v1328_v37, %v566_v21  ;;  %v607_v41 = vsub.f32 %v1330_v38, %v566_v21 }
 0x2f5   : > { %1028 = vpow2.f32 %v664_v43  ;;  %715 = vmatprep.subr.bf16.mxu0 %v703_v22  ;;  %v1015_v45 = vpop.eup %1014 }
 0x2f6   : > { %v652_v44 = vmul.f32 1.442695, %v607_v41  ;;  %716 = vmatpush1.bf16.xpose.msra.mxu0 %v702_v20  ;;  %v650_v56 = vmul.f32 1.442695, %v606_v24  ;;  %v1017_v54 = vpop.eup %1016  ;;  %1030 = vpow2.f32 %v656_v23 }
 0x2f7   : > { %v560_v59 = vpop.xlane.xlu1 %559 }
 0x2f8   : > { %v603_v55 = vsub.f32 %v1322_v34, %v560_v59  ;;  %1032 = vpow2.f32 %v652_v44  ;;  %v602_v51 = vsub.f32 %v1320_v33, %v560_v59 }
 0x2f9   : > { %v1019_v60 = vpop.eup %1018  ;;  %1034 = vpow2.f32 %v650_v56 }
 0x2fa   : > { %v1021_v58 = vpop.eup %1020  ;;  %v700_v37 = vpack.c.bf16 %v1019_v60, %v1015_v45  ;;  %v644_v39 = vmul.f32 1.442695, %v603_v55  ;;  %1036 = vpow2.f32 %v654_v57  ;;  %v642_v5 = vmul.f32 1.442695, %v602_v51 }
 0x2fb   : > { %v563_v38 = vpop.xlane.xlu1 %562  ;;  %v701_v61 = vpack.c.bf16 %v1021_v58, %v1017_v54  ;;  %v904_v57 = vcombine.low %v1386_v10, %v1386_v10 }
 0x2fc   : > { %v604_v62 = vsub.f32 %v1324_v35, %v563_v38  ;;  %v605_v50 = vsub.f32 %v1326_v36, %v563_v38  ;;  %1038 = vpow2.f32 %v644_v39 }
 0x2fd   : > { %717 = vmatprep.subr.bf16.mxu0 %v701_v61  ;;  %v1023_v34 = vpop.eup %1022  ;;  %v756_v61 = vlaneseq }
 0x2fe   : > { %v648_v63 = vmul.f32 1.442695, %v605_v50  ;;  %718 = vmatpush1.bf16.xpose.msra.mxu0 %v700_v37  ;;  %v1025_v1 = vpop.eup %1024  ;;  %v646_v52 = vmul.f32 1.442695, %v604_v62  ;;  %v754_v50 = vstv %s322_s19  ;;  %s1068_s19 = sshll.u32 %s1161_s26, 4  ;;  %s1069_s19 = int_to_ptr.vmem [resolvable:$false] %s1068_s19 }
 0x2ff   : > { %v554_v0 = vpop.xlane.xlu1 %553  ;;  %v757_v62 = vshrl.u32 %v756_v61, 7  ;;  %s1070_s14 = scalar_lea.vmem %s1069_s19, 128  ;;  %p1071_p4 = scmp.lt.s32.totalorder %s780_s21, %s1069_s19 }
 0x300   : > { %v599_v53 = vsub.f32 %v1314_v30, %v554_v0  ;;  %1040 = vpow2.f32 %v648_v63  ;;  %v598_v9 = vsub.f32 %v1312_v29, %v554_v0  ;;  %p1072_p5 = scmp.lt.s32.totalorder %s1070_s14, %s1064_s27 }
 0x301   : > { %v1027_v2 = vpop.eup %1026  ;;  %1042 = vpow2.f32 %v646_v52  ;;  %v758_v51 = vsub.s32 4, %v757_v62 }
 0x302   : > { %v1029_v4 = vpop.eup %1028  ;;  %v698_v35 = vpack.c.bf16 %v1027_v2, %v1023_v34  ;;  %v636_v7 = vmul.f32 1.442695, %v599_v53  ;;  %1044 = vpow2.f32 %v642_v5  ;;  %v634_v14 = vmul.f32 1.442695, %v598_v9  ;;  %p1073_p6 = por %p1072_p5, %p1071_p4 }
 0x303   : > { %v557_v6 = vpop.xlane.xlu1 %556  ;;  %v699_v36 = vpack.c.bf16 %v1029_v4, %v1025_v1  ;;  %v1031_v8 = vpop.eup %1030 }
 0x304   : > { %v600_v33 = vsub.f32 %v1316_v31, %v557_v6  ;;  %v601_v46 = vsub.f32 %v1318_v32, %v557_v6  ;;  %1046 = vpow2.f32 %v636_v7  ;;  %p1074_p7 = pnand %p1073_p6, %p1067_p2 }
 0x305   : > { %719 = vmatprep.subr.bf16.mxu0 %v699_v36  ;;  %v1033_v47 = vpop.eup %1032 }
 0x306   : > { %v640_v30 = vmul.f32 1.442695, %v601_v46  ;;  %720 = vmatpush1.bf16.xpose.msra.mxu0 %v698_v35  ;;  %v697_v48 = vpack.c.bf16 %v1031_v8, %v1033_v47  ;;  %v1035_v49 = vpop.eup %1034  ;;  %v638_v12 = vmul.f32 1.442695, %v600_v33 }
 0x307   : > { %v548_v11 = vpop.xlane.xlu1 %547  ;;  %v1037_v31 = vpop.eup %1036 }
 0x308   : > { %v595_v13 = vsub.f32 %v1306_v26, %v548_v11  ;;  %1048 = vpow2.f32 %v640_v30  ;;  %721 = vmatprep.subr.bf16.mxu0 %v697_v48  ;;  %v696_v15 = vpack.c.bf16 %v1037_v31, %v1035_v49  ;;  %v594_v42 = vsub.f32 %v1304_v25, %v548_v11 }
 0x309   : > { %1050 = vpow2.f32 %v638_v12  ;;  %v1039_v18 = vpop.eup %1038 }
 0x30a   : > { %v628_v16 = vmul.f32 1.442695, %v595_v13  ;;  %1052 = vpow2.f32 %v634_v14  ;;  %v626_v22 = vmul.f32 1.442695, %v594_v42 }
 0x30b   : > { %v551_v32 = vpop.xlane.xlu1 %550 }
 0x30c   : > { %v596_v17 = vsub.f32 %v1308_v27, %v551_v32  ;;  %v597_v29 = vsub.f32 %v1310_v28, %v551_v32  ;;  %1054 = vpow2.f32 %v628_v16 }
 0x30d   : > { %v1041_v19 = vpop.eup %1040 }
 0x30e   : > { %v632_v43 = vmul.f32 1.442695, %v597_v29  ;;  %722 = vmatpush1.bf16.xpose.msra.mxu0 %v696_v15  ;;  %v695_v26 = vpack.c.bf16 %v1041_v19, %v1039_v18  ;;  %v630_v20 = vmul.f32 1.442695, %v596_v17  ;;  %v1043_v21 = vpop.eup %1042 }
 0x30f   : > { %v1045_v23 = vpop.eup %1044 }
 0x310   : > { %1056 = vpow2.f32 %v632_v43  ;;  %723 = vmatprep.subr.bf16.mxu0 %v695_v26  ;;  %v694_v24 = vpack.c.bf16 %v1043_v21, %v1045_v23 }
 0x311   : > { %1058 = vpow2.f32 %v630_v20  ;;  %v1047_v27 = vpop.eup %1046 }
 0x312   : > { %1060 = vpow2.f32 %v626_v22 }
 0x315   : > { %v1049_v41 = vpop.eup %1048 }
 0x316   : > { %724 = vmatpush1.bf16.xpose.msra.mxu0 %v694_v24  ;;  %v693_v28 = vpack.c.bf16 %v1049_v41, %v1047_v27  ;;  %v1051_v40 = vpop.eup %1050 }
 0x317   : > { %v1053_v25 = vpop.eup %1052 }
 0x318   : > { %725 = vmatprep.subr.bf16.mxu0 %v693_v28  ;;  %v692_v44 = vpack.c.bf16 %v1051_v40, %v1053_v25 }
 0x319   : > { %v1055_v45 = vpop.eup %1054 }
 0x31d   : > { %v1057_v56 = vpop.eup %1056 }
 0x31e   : > { %726 = vmatpush1.bf16.xpose.msra.mxu0 %v692_v44  ;;  %v691_v59 = vpack.c.bf16 %v1057_v56, %v1055_v45  ;;  %v1059_v54 = vpop.eup %1058 }
 0x31f   : > { %v1061_v55 = vpop.eup %1060 }
 0x320   : > { %727 = vmatprep.subr.bf16.mxu0 %v691_v59  ;;  %v690_v60 = vpack.c.bf16 %v1059_v54, %v1061_v55 }
 0x326   : > { %728 = vmatpush1.bf16.xpose.msra.mxu0 %v690_v60 }
 0x32d   : > { %746 = vmatmul.mubr.bf16.vlgmr.msra.gmra.mxu0 %v904_v57 }
 0x3ed   : > { %v747_v58 = vpop.f32.mrf.mxu0 }
 0x3ee   : > { %1062 = vrcp.f32 %v747_v58 }
 0x3ef   : > { %v749_v37 = vpop.f32.mrf.mxu0 }
 0x3f1   : > { %v750_v38 = vpop.f32.mrf.mxu0 }
 0x3f3   : > { %v751_v39 = vpop.f32.mrf.mxu0 }
 0x3fb   : > { %v1063_v63 = vpop.eup %1062 }
 0x3fc   : > { %v755_v34 = vmul.f32 %v1063_v63, %v754_v50 }
 0x3fe   : > { %v759_v10 = vrot.slane %v755_v34, %v758_v51 }
 0x400   : > { %v760_v0 = vmul.f32 %v759_v10, %v747_v58 }
 0x402   : > { %v761_v1 = vadd.f32 %v760_v0, %v1284_v3 }
 0x404   : > { %762 = vst [vmem:[%s297_s20] sm:$0xf] %v761_v1 }
 0x405   : > { %1077 = shalt.err (!%p1074_p7)
}
 0x406   : > { %s1078_s15 = scalar_lea.hbm %s777_s7, 64  ;;  %s1082_s18 = scalar_lea.hbm %s1471_s6, 256 }
 0x407   : > { %p1079_p9 = scmp.ne.s32.totalorder %s777_s7, %s1078_s15  ;;  %p1083_p12 = scmp.lt.s32.totalorder %s777_s7, %s1471_s6 }
 0x408   : > { %p1084_p13 = scmp.lt.s32.totalorder %s1082_s18, %s1078_s15 }
 0x409   : > { %p1080_p10 = pnand %p1079_p9, %p1251_p3 }
 0x40a   : > { %p1085_p0 = por %p1084_p13, %p1083_p12 }
 0x40b   : > { %p1081_p11 = pneg %p1080_p10 }
 0x40d   : > { %p1086_p1 = pnand %p1085_p0, %p1081_p11 }
 0x40f   : > { %1089 = shalt.err (!%p1086_p1)
}
 0x410   : > { %921 = dma.vmem_to_hbm [thread:$0]  (%p1251_p3), %s780_s21, 64, %s777_s7, %s764_s10  }
 0x411 PF: > { %p927_p2 = scmp.ge.s32.totalorder %s1156_s30, 2  ;;  %s791_s5 = sand.u32 1, %s1128_s23  }
 0x412   : > { %s792_s27 = scalar_lea.sflag [#allocation4], %s791_s5 }
 0x413   : > { %p924_p4 = pnand %p927_p2, %p1260_p8 }
 0x415   : > { %p925_p5 = pneg %p924_p4 }
 0x417   : > { %1123 = dma.done.wait (%p925_p5), %s792_s27, 64  }
 0x418   : > { %1125 = vsyncadd (%p925_p5), %s792_s27, 4294967232  ;;  %s20_s30 = sadd.s32 1, %s1156_s30   ;;  %s1474_s23 = smov %s1132_s24 }
 0x419   : > { %p17_p6 = scmp.ge.s32.totalorder %s20_s30, 6   ;;  %s1475_s24 = smov %s1136_s25 }
 0x41a   : > { %s1476_s25 = smov %s1269_s16  ;;  %s1477_s26 = smov %s1148_s28 }
 0x41b   : > { %s1478_s27 = smov %s1152_s29  ;;  %s1479_s28 = smov %s1482_s8 }
 0x41c   : > { %s1480_s29 = smov %s1486_s9  ;;  %19 = sbr.rel (!%p17_p6) target bundleno = 7 (0x7), region = 85 }
 0x421   :  { %797 = vsyncpa [#allocation4], 1 }
 0x422   :  { %799 = vsyncpa [#allocation4 + $0x1], 1 }

</bundles_post_ra>
